<compile_context>
chip_gen: v6e
topology: v6e:2x2x1
jax: 0.10.0
libtpu: 0.0.40
codegen_flags: <defaults>
</compile_context>

<pallas_src>
import functools

import jax
import jax.numpy as jnp
from jax.experimental import pallas as pl
from jax.experimental.pallas import tpu as pltpu


def _generic_basis_kernel(theta_ref, back_ref, fore_ref, *, backcast_size,
                          forecast_offset, forecast_size):
    # Static column windows read straight out of the VMEM tile.
    back_ref[...] = theta_ref[:, pl.ds(0, backcast_size)]
    fore_ref[...] = theta_ref[:, pl.ds(forecast_offset, forecast_size)]


def _roundup(x, m):
    return ((x + m - 1) // m) * m


def _pick_batch_tile(batch, theta_dim, backcast_size, forecast_size, dtype):
    """Batch tile: sublane multiple, multi-MiB DMAs, >=2 grid steps if possible.

    Returns (tile_rows, bytes_per_row) where bytes_per_row covers the input
    row plus both output rows (i.e. one pipelined step's per-row footprint).
    """
    itemsize = jnp.dtype(dtype).itemsize
    sublane = max(8, 32 // itemsize)            # 8 rows f32, 16 bf16, 32 int8
    bytes_per_row = (theta_dim + backcast_size + forecast_size) * itemsize

    # Target ~4 MiB for the theta tile alone: large DMAs, few grid steps.
    # Steady state (input + both outputs, double-buffered) stays well under
    # v7x's 64 MiB per-core VMEM and is tiny relative to v5e/v6e's 128 MiB.
    target_tile_bytes = 4 * 1024 * 1024
    tb = (target_tile_bytes // (theta_dim * itemsize)) // sublane * sublane
    tb = max(sublane, tb)

    # Expose at least 2 grid steps when batch allows, so the "parallel" batch
    # axis can be sharded across both TensorCores on v7x.  Costs ~nothing on
    # single-TC v5e/v6e (per-step overhead ~0.35 us).
    if batch >= 2 * sublane:
        tb = min(tb, _roundup(pl.cdiv(batch, 2), sublane))

    if tb >= batch:
        tb = batch                              # full-dim block is always legal
    return tb, bytes_per_row


def generic_basis(theta, forecast_size, backcast_size):
    """theta: (batch, theta_dim) -> (backcast (batch, backcast_size),
                                     forecast (batch, forecast_size))"""
    batch, theta_dim = theta.shape
    assert backcast_size <= theta_dim and forecast_size <= theta_dim
    forecast_offset = theta_dim - forecast_size   # matches theta[:, -forecast_size:]

    tb, bytes_per_row = _pick_batch_tile(
        batch, theta_dim, backcast_size, forecast_size, theta.dtype)
    grid = (pl.cdiv(batch, tb),)

    # Double-buffered steady-state footprint for one core; derive the VMEM
    # ceiling from it (floor at the scoped default, cap below v7x's 64 MiB).
    footprint = 2 * tb * bytes_per_row
    vmem_limit = min(max(2 * footprint, 16 * 1024 * 1024), 48 * 1024 * 1024)

    kernel = functools.partial(
        _generic_basis_kernel,
        backcast_size=backcast_size,
        forecast_offset=forecast_offset,
        forecast_size=forecast_size,
    )

    out_shapes = (
        jax.ShapeDtypeStruct((batch, backcast_size), theta.dtype),
        jax.ShapeDtypeStruct((batch, forecast_size), theta.dtype),
    )

    return pl.pallas_call(
        kernel,
        out_shape=out_shapes,
        grid_spec=pltpu.PrefetchScalarGridSpec(
            num_scalar_prefetch=0,
            grid=grid,
            # Lane dim of every block equals that array's full last dim, and
            # the batch dim of every block is a sublane multiple (or the full
            # batch), so all block shapes satisfy the (8,128)-or-full rule.
            in_specs=[pl.BlockSpec((tb, theta_dim), lambda i: (i, 0))],
            out_specs=[
                pl.BlockSpec((tb, backcast_size), lambda i: (i, 0)),
                pl.BlockSpec((tb, forecast_size), lambda i: (i, 0)),
            ],
        ),
        compiler_params=pltpu.CompilerParams(
            # Batch tiles are independent: shard across TensorCores on v7x.
            dimension_semantics=("parallel",),
            vmem_limit_bytes=vmem_limit,
        ),
    )(theta)


if __name__ == "__main__":
    key = jax.random.PRNGKey(0)

    def run_and_check(batch, backcast_size, forecast_size, theta_dim, *, seed):
        k = jax.random.fold_in(key, seed)
        theta = jax.random.normal(k, (batch, theta_dim), dtype=jnp.float32)
        backcast, forecast = generic_basis(theta, forecast_size, backcast_size)
        jax.block_until_ready((backcast, forecast))
        assert backcast.shape == (batch, backcast_size)
        assert forecast.shape == (batch, forecast_size)
        assert jnp.array_equal(backcast, theta[:, :backcast_size])
        assert jnp.array_equal(forecast, theta[:, -forecast_size:])

    # Typical N-BEATS generic block (theta = contiguous [backcast | forecast]);
    # small batch -> split into 2 blocks so both v7x cores would participate.
    run_and_check(batch=16, backcast_size=16, forecast_size=8, theta_dim=24,
                  seed=1)
    # Larger batch: exercises the pipelined multi-step grid path.
    run_and_check(batch=192, backcast_size=16, forecast_size=8, theta_dim=24,
                  seed=2)
    # theta_dim > backcast + forecast (forecast window starts mid-row) and a
    # batch that is not a sublane multiple (partial last tile is masked).
    run_and_check(batch=20, backcast_size=16, forecast_size=8, theta_dim=40,
                  seed=3)

    print("KERNEL_OK")
</pallas_src>

<mosaic_0001>
module attributes {stable_mosaic.version = 11 : i64} {
  func.func @_generic_basis_kernel(%arg0: i32, %arg1: memref<8x24xf32, #tpu.memory_space<vmem>>, %arg2: memref<8x16xf32, #tpu.memory_space<vmem>>, %arg3: memref<8x8xf32, #tpu.memory_space<vmem>>) attributes {dimension_semantics = [#tpu.dimension_semantics<parallel>], iteration_bounds = array<i64: 2>, scalar_prefetch = 0 : i64, scratch_operands = 0 : i64, tpu.core_type = #tpu.core_type<tc>, window_params = [{transform_indices = @transform_0, window_bounds = array<i64: 8, 24>}, {transform_indices = @transform_1, window_bounds = array<i64: 8, 16>}, {transform_indices = @transform_2, window_bounds = array<i64: 8, 8>}]} {
    %c0 = arith.constant 0 : index
    %c0_0 = arith.constant 0 : index
    %0 = vector.load %arg1[%c0, %c0_0] : memref<8x24xf32, #tpu.memory_space<vmem>>, vector<8x16xf32>
    %c0_1 = arith.constant 0 : index
    %c0_2 = arith.constant 0 : index
    %1 = vector.load %arg2[%c0_1, %c0_2] : memref<8x16xf32, #tpu.memory_space<vmem>>, vector<8x16xf32>
    tpu.vector_store %arg2[%c0_1, %c0_2], %0 {strides = array<i32>} : memref<8x16xf32, #tpu.memory_space<vmem>>, vector<8x16xf32>,
    %c0_3 = arith.constant 0 : index
    %c16 = arith.constant 16 : index
    %2 = vector.load %arg1[%c0_3, %c16] : memref<8x24xf32, #tpu.memory_space<vmem>>, vector<8x8xf32>
    %c0_4 = arith.constant 0 : index
    %c0_5 = arith.constant 0 : index
    %3 = vector.load %arg3[%c0_4, %c0_5] : memref<8x8xf32, #tpu.memory_space<vmem>>, vector<8x8xf32>
    tpu.vector_store %arg3[%c0_4, %c0_5], %2 {strides = array<i32>} : memref<8x8xf32, #tpu.memory_space<vmem>>, vector<8x8xf32>,
    return
  }
  func.func @transform_0(%arg0: i32) -> (i32, i32) {
    %c0_i32 = arith.constant 0 : i32
    %c0_i32_0 = arith.constant 0 : i32
    return %arg0, %c0_i32 : i32, i32
  }
  func.func @transform_1(%arg0: i32) -> (i32, i32) {
    %c0_i32 = arith.constant 0 : i32
    %c0_i32_0 = arith.constant 0 : i32
    return %arg0, %c0_i32 : i32, i32
  }
  func.func @transform_2(%arg0: i32) -> (i32, i32) {
    %c0_i32 = arith.constant 0 : i32
    %c0_i32_0 = arith.constant 0 : i32
    return %arg0, %c0_i32 : i32, i32
  }
}

</mosaic_0001>

<bundles_post_ra>
// kernel: tpu_custom_call.1
= control target key start
LH: loop header
LB: loop body
LE: loop exit
PB: predicated region body
PF: predicated region fallthrough
CT: control target
= control target key end

     0   :  { %8 = vsyncpa [#allocation3], 0  ;;  %s625_s0 = inlined_call_operand.hbm [shape: f32[16,24], index: 0, kind: input, shape index: {}]   ;;  %s626_s1 = inlined_call_operand.hbm [shape: f32[16,16], index: 1, kind: output, shape index: {0}]   ;;  %s627_s2 = inlined_call_operand.vmem [shape: f32[16,8], index: 2, kind: output, shape index: {1}]  }
   0x1   :  { %10 = vsyncpa [#allocation3 + $0x1], 0 }
   0x2   :  { %11 = vsyncpa [#allocation4], 0 }
   0x3   :  { %13 = vsyncpa [#allocation4 + $0x1], 0  ;;  %s467_s9 = smov 0   ;;  %s469_s10 = smov 0  }
   0x4   :  { %s471_s11 = smov 0   ;;  %s473_s12 = smov 0  }
   0x5 LB: > { %s488_s13 = sadd.s32 4294967295, %s447_s12   ;;  %s295_s14 = sadd.s32 4294967294, %s447_s12   ;;  %s447_s12 = sphi %s473_s12, %s644_s12   ;;  %s443_s11 = sphi %s471_s11, %s643_s11   ;;  %s439_s10 = sphi %s469_s10, %s642_s10   ;;  %s435_s9 = sphi %s467_s9, %s641_s9  }
   0x6   : > { %s492_s15 = sadd.s32 1, %s447_s12   ;;  %s26_s16 = sadd.s32 1, %s443_s11 }
   0x7   : > { %s23_s17 = ssub.s32 %s447_s12, %s492_s15  ;;  %p33_p0 = scmp.ne.s32.totalorder %s443_s11, %s439_s10 }
   0x8   : > { %p24_p1 = scmp.eq.s32.totalorder %s23_s17, 0  ;;  %p34_p2 = scmp.eq.s32.totalorder %s447_s12, 0 }
   0x9   : > { %p39_p3 = scmp.ne.s32.totalorder %s439_s10, %s435_s9  ;;  %p40_p4 = scmp.eq.s32.totalorder %s488_s13, 0 }
   0xa   : > { %s504_s18 = scalar_select %p24_p1, %s443_s11, %s26_s16  }
   0xb   : > { %p506_p5 = por %p34_p2, %p33_p0  ;;  %p510_p6 = por %p40_p4, %p39_p3 }
   0xc   : > { %p63_p7 = scmp.eq.s32.totalorder %s488_s13, 1  ;;  %p69_p8 = scmp.eq.s32.totalorder %s295_s14, 1 }
   0xd   : > { %s631_s20 = scalar_select %p510_p6, 1, 0 }
   0xe   : > { %p320_p10 = scmp.lt.s32.totalorder %s447_s12, 2  ;;  %p517_p11 = por %p63_p7, %p33_p0 }
   0xf   : > { %p521_p12 = por %p69_p8, %p39_p3  ;;  %s115_s23 = sand.u32 1, %s443_s11  }
  0x10   : > { %s632_s21 = scalar_select %p517_p11, 1, 0 }
  0x11   : > { %s633_s22 = scalar_select %p521_p12, 1, 0 }
  0x12   : > { %s299_s24 = sshll.u32 %s447_s12, 7  ;;  %s298_s25 = sshll.u32 %s115_s23, 3 }
  0x13   : > { %s530_s28 = scalar_lea.hbm %s625_s0, %s299_s24  ;;  %s119_s29 = scalar_lea.vmem [#allocation2], %s298_s25 }
  0x14   : > { %s126_s30 = sshll.u32 %s119_s29, 4  ;;  %p534_p13 = pnand %p320_p10, %p506_p5  ;;  %s538_s30 = int_to_ptr.vmem [resolvable:$true] %s126_s30 }
  0x15   : > { %s116_s4 = scalar_lea.sflag [#allocation3], %s115_s23  ;;  %s355_s5 = scalar_lea.hbm %s530_s28, 128 }
  0x16   : > { %p356_p2 = scmp.ne.s32.totalorder %s530_s28, %s355_s5  ;;  %p357_p3 = pneg %p534_p13 }
  0x17   : > { %s360_s8 = scalar_lea.hbm %s625_s0, 256  ;;  %p361_p5 = scmp.lt.s32.totalorder %s530_s28, %s625_s0 }
  0x18   : > { %p358_p4 = pnand %p357_p3, %p356_p2  ;;  %p362_p8 = scmp.lt.s32.totalorder %s360_s8, %s355_s5 }
  0x1a   : > { %p359_p7 = pneg %p358_p4  ;;  %p363_p10 = por %p362_p8, %p361_p5 }
  0x1c   : > { %p364_p9 = pnand %p363_p10, %p359_p7 }
  0x1e   : > { %367 = shalt.err (!%p364_p9)
}
  0x1f   : > { %s368_s17 = scalar_lea.vmem %s538_s30, 128  ;;  %s449_s19 = smov [#allocation2]  }
  0x20   : > { %p369_p0 = scmp.ne.s32.totalorder %s538_s30, %s368_s17  ;;  %s373_s23 = sshll.u32 %s449_s19, 4  ;;  %s374_s23 = int_to_ptr.vmem [resolvable:$false] %s373_s23 }
  0x21   : > { %s375_s24 = scalar_lea.vmem %s374_s23, 256  ;;  %p376_p4 = scmp.lt.s32.totalorder %s538_s30, %s374_s23 }
  0x22   : > { %p371_p1 = pnand %p369_p0, %p357_p3  ;;  %p377_p12 = scmp.lt.s32.totalorder %s375_s24, %s368_s17 }
  0x24   : > { %p372_p2 = pneg %p371_p1  ;;  %p378_p11 = por %p377_p12, %p376_p4 }
  0x26   : > { %p379_p6 = pnand %p378_p11, %p372_p2 }
  0x28   : > { %382 = shalt.err (!%p379_p6)
}
  0x29   : > { %315 = dma.hbm_to_vmem [thread:$0]  (!%p534_p13), %s530_s28, 128, %s538_s30, %s116_s4  }
  0x2a   : > { %p635_p9 = scmp.lt.s32.totalorder %s447_s12, 3  ;;  %p636_p7 = scmp.ge.s32.totalorder %s447_s12, 1 }
  0x2c   : > { %p132_p0 = pnand %p636_p7, %p635_p9 }
  0x2d   : > { %s565_s25 = sand.u32 (!%p132_p0), 1, %s439_s10   ;;  %p637_p6 = scmp.ne.s32.totalorder (!%p132_p0), %s631_s20, 0 }
  0x2e   : > { %135 = sbr.rel (%p132_p0) target bundleno = 171 (0xab), region = 24  ;;  %s301_s26 = sshll.u32 (!%p132_p0), %s565_s25, 3 }
  0x2f   : > { %s138_s27 = scalar_lea.sflag (!%p132_p0), [#allocation3], %s565_s25  ;;  %s141_s29 = scalar_lea.vmem (!%p132_p0), [#allocation2], %s301_s26 }
  0x33   : > { %426 = dma.done.wait (%p637_p6), %s138_s27, 128  }
  0x34   : > { %428 = vsyncadd (%p637_p6), %s138_s27, 4294967168  ;;  %s305_s28 = sshll.u32 %s488_s13, 7  ;;  %s159_s30 = scalar_lea.vmem [#allocation5], %s301_s26  ;;  %vm171_vm0 = vcmask 130048   ;;  %v173_v0 = vld [vmem:[%s141_s29] sm:$0xff] }
  0x35   : > { %s198_s3 = sshll.u32 %s159_s30, 4  ;;  %s577_s6 = scalar_lea.hbm %s626_s1, %s305_s28  ;;  %172 = vst.msk [vmem:[%s159_s30] sm:$0xff] %vm171_vm0, %v173_v0  ;;  %s579_s3 = int_to_ptr.vmem [resolvable:$true] %s198_s3 }
  0x36   : > { %s450_s20 = smov 112   ;;  %s181_s7 = scalar_lea.sflag [#allocation4], %s565_s25 }
  0x37   : > { %175 = vrot.lane.b32.xlu0 %v173_v0, %s450_s20  ;;  %s383_s8 = scalar_lea.vmem %s579_s3, 128  ;;  %p638_p12 = scmp.ne.s32.totalorder %s632_s21, 0 }
  0x38   : > { %p384_p11 = scmp.ne.s32.totalorder %s579_s3, %s383_s8  ;;  %s451_s14 = smov [#allocation5]  }
  0x39   : > { %s387_s16 = sshll.u32 %s451_s14, 4  ;;  %s388_s16 = int_to_ptr.vmem [resolvable:$false] %s387_s16 }
  0x3a   : > { %p385_p13 = pnand %p384_p11, %p638_p12  ;;  %s389_s17 = scalar_lea.vmem %s388_s16, 256 }
  0x3b   : > { %p390_p3 = scmp.lt.s32.totalorder %s579_s3, %s388_s16  ;;  %p391_p5 = scmp.lt.s32.totalorder %s389_s17, %s383_s8 }
  0x3c   : > { %p386_p1 = pneg %p385_p13 }
  0x3d   : > { %p392_p8 = por %p391_p5, %p390_p3 }
  0x3f   : > { %p393_p10 = pnand %p392_p8, %p386_p1 }
  0x41   : > { %396 = shalt.err (!%p393_p10)
}
  0x42   : > { %s397_s19 = scalar_lea.hbm %s577_s6, 128  ;;  %s401_s25 = scalar_lea.hbm %s626_s1, 256 }
  0x43   : > { %p398_p2 = scmp.ne.s32.totalorder %s577_s6, %s397_s19  ;;  %p402_p7 = scmp.lt.s32.totalorder %s577_s6, %s626_s1 }
  0x44   : > { %p403_p0 = scmp.lt.s32.totalorder %s401_s25, %s397_s19 }
  0x45   : > { %p399_p4 = pnand %p398_p2, %p638_p12 }
  0x46   : > { %p404_p6 = por %p403_p0, %p402_p7 }
  0x47   : > { %p400_p9 = pneg %p399_p4 }
  0x49   : > { %p405_p11 = pnand %p404_p6, %p400_p9 }
  0x4b   : > { %408 = shalt.err (!%p405_p11)
}
  0x4c   : > { %310 = dma.vmem_to_hbm [thread:$0]  (%p638_p12), %s579_s3, 128, %s577_s6, %s181_s7   ;;  %vm178_vm1 = vcmask 64512  }
  0x4d   : > { %p166_p13 = scmp.lt.s32.totalorder %s488_s13, 1 }
  0x4f   : > { %s646_s13 = smov (!%p166_p13, %s488_s13), 1 }
  0x50   : > { %s303_s29 = sshll.u32 %s646_s13, 3 }
  0x51   : > { %s169_s4 = scalar_lea.vmem %s627_s2, %s303_s29 }
  0xa9   : > { %v176_v1 = vpop.permute.xlu0 %175 }
  0xaa   : > { %179 = vst.msk [vmem:[%s169_s4] sm:$0xff] %vm178_vm1, %v176_v1 }
  0xab PF: > { %s213_s21 = sand.u32 1, %s435_s9   ;;  %p639_p1 = scmp.ne.s32.totalorder %s633_s22, 0 }
  0xac   : > { %p640_p3 = scmp.ge.s32.totalorder %s447_s12, 2  ;;  %s214_s3 = scalar_lea.sflag [#allocation4], %s213_s21 }
  0xae   : > { %p317_p5 = pnand %p640_p3, %p639_p1 }
  0xb0   : > { %p318_p8 = pneg %p317_p5 }
  0xb2   : > { %430 = dma.done.wait (%p318_p8), %s214_s3, 128  }
  0xb3   : > { %432 = vsyncadd (%p318_p8), %s214_s3, 4294967168  ;;  %p16_p12 = scmp.ge.s32.totalorder %s492_s15, 4   ;;  %s641_s9 = smov %s439_s10 }
  0xb4   : > { %s642_s10 = smov %s443_s11  ;;  %s643_s11 = smov %s504_s18 }
  0xb5   : > { %s644_s12 = smov %s492_s15  ;;  %18 = sbr.rel (!%p16_p12) target bundleno = 5 (0x5), region = 81 }
  0xba   :  { %226 = vsyncpa [#allocation3], 1 }
  0xbb   :  { %228 = vsyncpa [#allocation3 + $0x1], 1 }
  0xbc   :  { %229 = vsyncpa [#allocation4], 1 }
  0xbd   :  { %231 = vsyncpa [#allocation4 + $0x1], 1 }

</bundles_post_ra>
